<compile_context>
chip_gen: v6e
topology: v6e:2x2x1
jax: 0.10.0
libtpu: 0.0.40
codegen_flags: <defaults>
</compile_context>

<pallas_src>
from collections import namedtuple

import jax
import jax.numpy as jnp
from jax import lax
from jax.experimental import pallas as pl
from jax.experimental.pallas import tpu as pltpu

LANE = 128          # TPU lane width; all feature dims are padded to this
SUBLANE = 8
MAX_M_TILE = 2048   # caps the double-buffered (ds + out) working set at ~10 MiB
NEG_INF = -1e30

TokenPrediction = namedtuple(
    "TokenPrediction",
    ("scores", "aligned_tokens", "utterance_attention_results", "decoder_state"),
)
AttentionResult = namedtuple("AttentionResult", ("scores", "distribution", "vector"))


def _round_up(x, m):
    return (x + m - 1) // m * m


def _pad_to(x, shape):
    pads = [(0, t - s) for s, t in zip(x.shape, shape)]
    return jnp.pad(x, pads)


# ---------------------------------------------------------------------------
# Parameter packing (done ONCE at setup time, not per call).
# ---------------------------------------------------------------------------
def pack_token_predictor_params(params):
    """Pack static weights into two lane-dense, 128-padded bf16 slabs.

    w_slab (128, 512) bf16: cols [0:128)   = W_q          (D, K) zero-padded
                            cols [128:256) = W_state[:D]  (D, D) zero-padded
                            cols [256:384) = W_vocab      (D, V) zero-padded
                            cols [384:512) = row 0 is b_vocab (V,), rest 0
    w_bot  (128, 128) bf16: W_state[D:]    (K, D) zero-padded.
    """
    wq = jnp.asarray(params["transform_query"], jnp.float32)                # (D, K)
    wstate = jnp.asarray(params["state_transform_weights"], jnp.float32)    # (D+K, D)
    wvocab = jnp.asarray(params["vocabulary_weights"], jnp.float32)         # (D, V)
    bvocab = jnp.asarray(params["vocabulary_biases"], jnp.float32)          # (V,)

    D, K = wq.shape
    V = wvocab.shape[1]
    if wstate.shape != (D + K, D):
        raise ValueError("state_transform_weights must be (D+K, D)")
    if D > LANE or K > LANE or V > LANE:
        # TODO(synk): tile over a V/K grid axis for vocabularies / key sizes > 128 lanes.
        raise ValueError("this kernel packs each feature dim into a single 128-lane tile")

    w_top = wstate[:D]      # (D, D)   multiplies the decoder state
    w_bot = wstate[D:]      # (K, D)   multiplies the attention context

    seg_q = _pad_to(wq, (LANE, LANE))
    seg_top = _pad_to(w_top, (LANE, LANE))
    seg_voc = _pad_to(wvocab, (LANE, LANE))
    seg_bias = _pad_to(bvocab[None, :], (LANE, LANE))
    w_slab = jnp.concatenate([seg_q, seg_top, seg_voc, seg_bias], axis=1)   # (128, 512)
    w_bot_p = _pad_to(w_bot, (LANE, LANE))                                  # (128, 128)

    return {
        "w_slab": w_slab.astype(jnp.bfloat16),
        "w_bot": w_bot_p.astype(jnp.bfloat16),
        "dims": (D, K, V),
    }


# ---------------------------------------------------------------------------
# Per-utterance packing (done once per utterance, reused across decode steps).
# ---------------------------------------------------------------------------
def make_utterance_inputs(input_hidden_states, packed):
    """Pad the keys to a (128, 128) bf16 slab and build the additive softmax mask."""
    D, K, V = packed["dims"]
    keys = jnp.asarray(input_hidden_states, jnp.float32)
    N = keys.shape[0]
    if keys.shape[1] != K:
        raise ValueError("input_hidden_states feature dim does not match packed params")
    if N > LANE:
        # TODO(synk): tile the attention over an N grid axis for utterances longer than 128.
        raise ValueError("utterance length must be <= 128 for this kernel")
    keys_p = _pad_to(keys, (LANE, LANE)).astype(jnp.bfloat16)               # (128, 128)
    mask_row = jnp.where(jnp.arange(LANE) < N, 0.0, NEG_INF).astype(jnp.float32)
    mask = jnp.zeros((SUBLANE, LANE), jnp.float32).at[0].set(mask_row)      # (8, 128)
    return {"keys": keys_p, "mask": mask, "n": N}


# ---------------------------------------------------------------------------
# Kernel: one M-tile of decoder states per grid step; weights/keys/mask resident.
# ---------------------------------------------------------------------------
def _token_predictor_kernel(ds_ref, keys_ref, wslab_ref, wbot_ref, mask_ref, out_ref):
    # ds_ref    : (MT, 128) bf16  -- decoder states, lane-padded
    # keys_ref  : (128, 128) bf16 -- input hidden states (keys == values), padded
    # wslab_ref : (128, 512) bf16 -- [W_q | W_state_top | W_vocab | bias-row]
    # wbot_ref  : (128, 128) bf16 -- W_state_bot
    # mask_ref  : (8, 128)  f32   -- row 0 = additive softmax mask (0 valid / -1e30 pad)
    # out_ref   : (MT, 512) f32   -- [vocab | attn scores | attn dist | context]
    ds = ds_ref[...]                                                        # (MT, 128) bf16
    keys = keys_ref[...]                                                    # (128, 128) bf16

    # --- fused ds-LHS matmul: [W_q | W_state_top] as one 256-wide RHS (fills the MXU) ---
    fused = jnp.dot(ds, wslab_ref[:, 0:2 * LANE],
                    preferred_element_type=jnp.float32)                     # (MT, 256) f32
    tq = fused[:, 0:LANE]                                                   # query transform
    ds_top = fused[:, LANE:2 * LANE]                                        # ds @ W_state_top

    # --- attention (contract last dims of both operands -> no keys.T / XLU transpose) ---
    attn = lax.dot_general(tq.astype(jnp.bfloat16), keys,
                           (((1,), (1,)), ((), ())),
                           preferred_element_type=jnp.float32)              # (MT, 128) f32
    masked = attn + mask_ref[0:1, :]                                        # additive mask row
    m = jnp.max(masked, axis=-1, keepdims=True)
    e = jnp.exp(masked - m)
    denom = jnp.sum(e, axis=-1, keepdims=True)
    dist = e / denom                                                        # exact softmax
    ctx = jnp.dot(dist.astype(jnp.bfloat16), keys,
                  preferred_element_type=jnp.float32)                       # (MT, 128) f32

    # --- intermediate: tanh(cat([state, ctx]) @ W_state) with W_state pre-split ---
    inter = jnp.tanh(
        ds_top
        + jnp.dot(ctx.astype(jnp.bfloat16), wbot_ref[...],
                  preferred_element_type=jnp.float32)
    )                                                                       # (MT, 128) f32
    # TODO(synk): dropout on the intermediate state (dropout_amount > 0) not implemented
    # (forward default 0.0 -> identity; only matters for training).

    # --- vocabulary scores ---
    vocab = (
        jnp.dot(inter.astype(jnp.bfloat16), wslab_ref[:, 2 * LANE:3 * LANE],
                preferred_element_type=jnp.float32)
        + wslab_ref[0:1, 3 * LANE:4 * LANE].astype(jnp.float32)             # bias row
    )                                                                       # (MT, 128) f32

    # --- single packed, 128-aligned, lane-dense output slab ---
    out_ref[:, 0 * LANE:1 * LANE] = vocab
    out_ref[:, 1 * LANE:2 * LANE] = attn
    out_ref[:, 2 * LANE:3 * LANE] = dist
    out_ref[:, 3 * LANE:4 * LANE] = ctx


# ---------------------------------------------------------------------------
# Raw padded entry point: no per-call pad / slice XLA ops.  Use this in tight
# decode loops (keep decoder states in a persistent (m_pad, 128) bf16 slab and
# consume the packed (m_pad, 512) output slab directly).
# ---------------------------------------------------------------------------
def token_predictor_forward_padded(ds_padded, utterance, packed, *, m_tile=None):
    m_pad = ds_padded.shape[0]
    if ds_padded.shape != (m_pad, LANE) or ds_padded.dtype != jnp.bfloat16:
        raise ValueError("ds_padded must be a (m_pad, 128) bf16 slab")
    if m_pad % 16 != 0:
        raise ValueError("m_pad must be a multiple of 16 (bf16 sublane packing)")
    if m_tile is None:
        m_tile = min(m_pad, MAX_M_TILE)
    if m_tile % 16 != 0 or m_pad % m_tile != 0:
        raise ValueError("m_tile must be a multiple of 16 and divide m_pad")

    grid = (m_pad // m_tile,)
    cost = pl.CostEstimate(
        # 5 matmuls/row: one 256-wide RHS + four 128-wide RHS
        flops=2 * m_pad * LANE * (6 * LANE),
        transcendentals=2 * m_pad * LANE,               # exp + tanh
        bytes_accessed=(m_pad * LANE * 2                # ds (bf16)
                        + LANE * LANE * 2               # keys (bf16)
                        + LANE * 4 * LANE * 2           # w_slab (bf16)
                        + LANE * LANE * 2               # w_bot (bf16)
                        + SUBLANE * LANE * 4            # mask (f32)
                        + m_pad * 4 * LANE * 4),        # output slab (f32)
    )
    # TODO(synk): on v7x with m_pad spanning >= 2 tiles, consider CORE_PARALLEL /
    # an explicit core_map to split the M axis across the two TensorCores.
    return pl.pallas_call(
        _token_predictor_kernel,
        out_shape=jax.ShapeDtypeStruct((m_pad, 4 * LANE), jnp.float32),
        grid_spec=pltpu.PrefetchScalarGridSpec(
            num_scalar_prefetch=0,
            grid=grid,
            in_specs=[
                pl.BlockSpec((m_tile, LANE), lambda i: (i, 0)),        # decoder states
                pl.BlockSpec((LANE, LANE), lambda i: (0, 0)),          # keys (resident)
                pl.BlockSpec((LANE, 4 * LANE), lambda i: (0, 0)),      # packed weights (resident)
                pl.BlockSpec((LANE, LANE), lambda i: (0, 0)),          # W_state bottom (resident)
                pl.BlockSpec((SUBLANE, LANE), lambda i: (0, 0)),       # additive mask (resident)
            ],
            out_specs=pl.BlockSpec((m_tile, 4 * LANE), lambda i: (i, 0)),
        ),
        compiler_params=pltpu.CompilerParams(
            dimension_semantics=("arbitrary",),
            vmem_limit_bytes=32 * 1024 * 1024,
        ),
        cost_estimate=cost,
    )(ds_padded, utterance["keys"], packed["w_slab"], packed["w_bot"], utterance["mask"])


# ---------------------------------------------------------------------------
# Convenience batched wrapper: M decoder states at once (pads + unpacks).
# ---------------------------------------------------------------------------
def token_predictor_forward_batched(decoder_states, input_hidden_states, packed,
                                    *, m_tile=None):
    D, K, V = packed["dims"]
    ds = jnp.asarray(decoder_states, jnp.float32)
    if ds.ndim == 1:
        ds = ds[None, :]
    M = ds.shape[0]
    if ds.shape[1] != D:
        raise ValueError("decoder state size does not match packed params")

    if m_tile is None:
        m_tile = min(_round_up(max(M, 1), 16), MAX_M_TILE)   # whole batch in one grid step
    m_pad = _round_up(max(M, 1), m_tile)

    ds_p = _pad_to(ds, (m_pad, LANE)).astype(jnp.bfloat16)
    utt = make_utterance_inputs(input_hidden_states, packed)
    N = utt["n"]

    out = token_predictor_forward_padded(ds_p, utt, packed, m_tile=m_tile)

    # Unpack the slab (done outside the kernel; avoid in tight loops by consuming the slab).
    vocab_scores = out[:M, 0:V]                              # (M, V)
    attn_scores = out[:M, LANE:LANE + N]                     # (M, N)
    attn_dist = out[:M, 2 * LANE:2 * LANE + N]               # (M, N)
    ctx = out[:M, 3 * LANE:3 * LANE + K]                     # (M, K)
    return vocab_scores, attn_scores, attn_dist, ctx


# ---------------------------------------------------------------------------
# Single-example wrapper mirroring the PyTorch module's forward() signature.
# ---------------------------------------------------------------------------
def token_predictor_forward(decoder_state, input_hidden_states, packed, vocab_tokens):
    D, K, V = packed["dims"]
    N = input_hidden_states.shape[0]
    vocab, attn, dist, ctx = token_predictor_forward_batched(
        decoder_state[None, :], input_hidden_states, packed)
    attention_results = AttentionResult(
        scores=attn.reshape(N, 1),          # torch: (N, 1)
        distribution=dist.reshape(N, 1),    # torch: (N, 1)
        vector=ctx.reshape(K),              # torch: (K,) after squeeze
    )
    return TokenPrediction(
        scores=vocab.reshape(V, 1),         # torch: torch.t(linear_layer(...)) -> (V, 1)
        aligned_tokens=list(vocab_tokens),
        utterance_attention_results=attention_results,
        decoder_state=decoder_state,
    )


# ---------------------------------------------------------------------------
# Plain-JAX (f32) mirror of the PyTorch forward, for verification.
# ---------------------------------------------------------------------------
def _reference_forward(decoder_state, keys, params):
    tq = decoder_state @ params["transform_query"]                          # (K,)
    attn = keys @ tq                                                        # (N,)
    dist = jax.nn.softmax(attn)                                             # (N,)
    ctx = dist @ keys                                                       # (K,)
    state_and_attn = jnp.concatenate([decoder_state, ctx])                  # (D+K,)
    inter = jnp.tanh(state_and_attn @ params["state_transform_weights"])    # (D,)
    vocab_scores = inter @ params["vocabulary_weights"] + params["vocabulary_biases"]
    return vocab_scores, attn, dist, ctx


if __name__ == "__main__":
    import numpy as np

    D = 32      # params.decoder_state_size
    K = 32      # attention_key_size
    N = 8       # number of input hidden states (utterance length)
    V = 24      # len(vocabulary)
    M = 8       # beam width / decode-step batch

    key = jax.random.PRNGKey(0)
    ks = jax.random.split(key, 7)
    params = {
        "transform_query":         0.1 * jax.random.normal(ks[0], (D, K), jnp.float32),
        "state_transform_weights": 0.1 * jax.random.normal(ks[1], (D + K, D), jnp.float32),
        "vocabulary_weights":      0.1 * jax.random.normal(ks[2], (D, V), jnp.float32),
        "vocabulary_biases":       0.1 * jax.random.normal(ks[3], (V,), jnp.float32),
    }
    decoder_states = jax.random.normal(ks[4], (M, D), jnp.float32)
    input_hidden_states = jax.random.normal(ks[5], (N, K), jnp.float32)
    vocab_tokens = [f"tok_{i}" for i in range(V)]

    packed = pack_token_predictor_params(params)

    # --- batched path (beam hypotheses processed in one kernel call / one grid step) ---
    vocab_b, attn_b, dist_b, ctx_b = token_predictor_forward_batched(
        decoder_states, input_hidden_states, packed)
    jax.block_until_ready(vocab_b)

    # --- single-example, module-style path ---
    pred = token_predictor_forward(decoder_states[0], input_hidden_states, packed, vocab_tokens)
    jax.block_until_ready(pred.scores)

    # --- verify against the plain-JAX (f32) reference of the PyTorch semantics ---
    ref_vocab, ref_attn, ref_dist, ref_ctx = jax.vmap(
        lambda s: _reference_forward(s, input_hidden_states, params))(decoder_states)

    tol = dict(rtol=2e-2, atol=2e-2)   # bf16 MXU operands vs f32 reference
    np.testing.assert_allclose(np.asarray(vocab_b), np.asarray(ref_vocab), **tol)
    np.testing.assert_allclose(np.asarray(attn_b), np.asarray(ref_attn), **tol)
    np.testing.assert_allclose(np.asarray(dist_b), np.asarray(ref_dist), **tol)
    np.testing.assert_allclose(np.asarray(ctx_b), np.asarray(ref_ctx), **tol)

    # attention distribution sums to 1 (exact division in the kernel softmax)
    np.testing.assert_allclose(np.asarray(dist_b).sum(-1), np.ones(M), rtol=1e-5, atol=1e-5)

    assert pred.scores.shape == (V, 1)
    assert pred.utterance_attention_results.scores.shape == (N, 1)
    assert pred.utterance_attention_results.distribution.shape == (N, 1)
    assert pred.utterance_attention_results.vector.shape == (K,)
    assert len(pred.aligned_tokens) == V
    np.testing.assert_allclose(np.asarray(pred.scores[:, 0]), np.asarray(ref_vocab[0]), **tol)
    np.testing.assert_allclose(np.asarray(pred.utterance_attention_results.scores[:, 0]),
                               np.asarray(ref_attn[0]), **tol)
    np.testing.assert_allclose(np.asarray(pred.utterance_attention_results.distribution[:, 0]),
                               np.asarray(ref_dist[0]), **tol)
    np.testing.assert_allclose(np.asarray(pred.utterance_attention_results.vector),
                               np.asarray(ref_ctx[0]), **tol)

    print("KERNEL_OK")
</pallas_src>

<mosaic_0001>
module attributes {stable_mosaic.version = 11 : i64} {
  func.func @_token_predictor_kernel(%arg0: i32, %arg1: memref<16x128xbf16, #tpu.memory_space<vmem>>, %arg2: memref<128x128xbf16, #tpu.memory_space<vmem>>, %arg3: memref<128x512xbf16, #tpu.memory_space<vmem>>, %arg4: memref<128x128xbf16, #tpu.memory_space<vmem>>, %arg5: memref<8x128xf32, #tpu.memory_space<vmem>>, %arg6: memref<16x512xf32, #tpu.memory_space<vmem>>) attributes {dimension_semantics = [#tpu.dimension_semantics<arbitrary>], iteration_bounds = array<i64: 1>, scalar_prefetch = 0 : i64, scratch_operands = 0 : i64, tpu.core_type = #tpu.core_type<tc>, window_params = [{transform_indices = @transform_0, window_bounds = array<i64: 16, 128>}, {pipeline_mode = #tpu.pipeline_mode<synchronous>, transform_indices = @transform_1, window_bounds = array<i64: 128, 128>}, {pipeline_mode = #tpu.pipeline_mode<synchronous>, transform_indices = @transform_2, window_bounds = array<i64: 128, 512>}, {pipeline_mode = #tpu.pipeline_mode<synchronous>, transform_indices = @transform_3, window_bounds = array<i64: 128, 128>}, {pipeline_mode = #tpu.pipeline_mode<synchronous>, transform_indices = @transform_4, window_bounds = array<i64: 8, 128>}, {transform_indices = @transform_5, window_bounds = array<i64: 16, 512>}]} {
    %c0 = arith.constant 0 : index
    %c0_0 = arith.constant 0 : index
    %0 = vector.load %arg1[%c0, %c0_0] : memref<16x128xbf16, #tpu.memory_space<vmem>>, vector<16x128xbf16>
    %c0_1 = arith.constant 0 : index
    %c0_2 = arith.constant 0 : index
    %1 = vector.load %arg2[%c0_1, %c0_2] : memref<128x128xbf16, #tpu.memory_space<vmem>>, vector<128x128xbf16>
    %c0_3 = arith.constant 0 : index
    %c0_4 = arith.constant 0 : index
    %2 = vector.load %arg3[%c0_3, %c0_4] : memref<128x512xbf16, #tpu.memory_space<vmem>>, vector<128x256xbf16>
    %cst = arith.constant dense<0.000000e+00> : vector<16x256xf32>
    %3 = tpu.matmul %0, %2, %cst {dimension_numbers = #tpu.dot_dimension_numbers<[1], [0], [0], [1], [0, 0, 1, 1], [], []>} : vector<16x128xbf16>, vector<128x256xbf16>, vector<16x256xf32> -> vector<16x256xf32>
    %4 = vector.extract_strided_slice %3 {offsets = [0, 0], sizes = [16, 128], strides = [1, 1]} : vector<16x256xf32> to vector<16x128xf32>
    %5 = vector.extract_strided_slice %3 {offsets = [0, 128], sizes = [16, 128], strides = [1, 1]} : vector<16x256xf32> to vector<16x128xf32>
    %6 = arith.truncf %4 : vector<16x128xf32> to vector<16x128xbf16>
    %cst_5 = arith.constant dense<0.000000e+00> : vector<16x128xf32>
    %7 = tpu.matmul %6, %1, %cst_5 {dimension_numbers = #tpu.dot_dimension_numbers<[1], [1], [0], [0], [0, 0, 1, 0], [], []>} : vector<16x128xbf16>, vector<128x128xbf16>, vector<16x128xf32> -> vector<16x128xf32>
    %c0_6 = arith.constant 0 : index
    %c0_7 = arith.constant 0 : index
    %8 = vector.load %arg5[%c0_6, %c0_7] : memref<8x128xf32, #tpu.memory_space<vmem>>, vector<1x128xf32>
    %9 = vector.broadcast %8 : vector<1x128xf32> to vector<16x128xf32>
    %10 = arith.addf %7, %9 : vector<16x128xf32>
    %cst_8 = arith.constant dense<0xFF800000> : vector<16xf32>
    %11 = vector.multi_reduction <maximumf>, %10, %cst_8 [1] : vector<16x128xf32> to vector<16xf32>
    %12 = vector.shape_cast %11 : vector<16xf32> to vector<16x1xf32>
    %13 = vector.broadcast %12 : vector<16x1xf32> to vector<16x128xf32>
    %14 = arith.subf %10, %13 : vector<16x128xf32>
    %15 = math.exp %14 : vector<16x128xf32>
    %cst_9 = arith.constant dense<0.000000e+00> : vector<16xf32>
    %16 = vector.multi_reduction <add>, %15, %cst_9 [1] : vector<16x128xf32> to vector<16xf32>
    %17 = vector.shape_cast %16 : vector<16xf32> to vector<16x1xf32>
    %18 = vector.broadcast %17 : vector<16x1xf32> to vector<16x128xf32>
    %19 = arith.divf %15, %18 : vector<16x128xf32>
    %20 = arith.truncf %19 : vector<16x128xf32> to vector<16x128xbf16>
    %cst_10 = arith.constant dense<0.000000e+00> : vector<16x128xf32>
    %21 = tpu.matmul %20, %1, %cst_10 {dimension_numbers = #tpu.dot_dimension_numbers<[1], [0], [0], [1], [0, 0, 1, 1], [], []>} : vector<16x128xbf16>, vector<128x128xbf16>, vector<16x128xf32> -> vector<16x128xf32>
    %22 = arith.truncf %21 : vector<16x128xf32> to vector<16x128xbf16>
    %c0_11 = arith.constant 0 : index
    %c0_12 = arith.constant 0 : index
    %23 = vector.load %arg4[%c0_11, %c0_12] : memref<128x128xbf16, #tpu.memory_space<vmem>>, vector<128x128xbf16>
    %cst_13 = arith.constant dense<0.000000e+00> : vector<16x128xf32>
    %24 = tpu.matmul %22, %23, %cst_13 {dimension_numbers = #tpu.dot_dimension_numbers<[1], [0], [0], [1], [0, 0, 1, 1], [], []>} : vector<16x128xbf16>, vector<128x128xbf16>, vector<16x128xf32> -> vector<16x128xf32>
    %25 = arith.addf %5, %24 : vector<16x128xf32>
    %26 = math.tanh %25 : vector<16x128xf32>
    %27 = arith.truncf %26 : vector<16x128xf32> to vector<16x128xbf16>
    %c0_14 = arith.constant 0 : index
    %c256 = arith.constant 256 : index
    %28 = vector.load %arg3[%c0_14, %c256] : memref<128x512xbf16, #tpu.memory_space<vmem>>, vector<128x128xbf16>
    %cst_15 = arith.constant dense<0.000000e+00> : vector<16x128xf32>
    %29 = tpu.matmul %27, %28, %cst_15 {dimension_numbers = #tpu.dot_dimension_numbers<[1], [0], [0], [1], [0, 0, 1, 1], [], []>} : vector<16x128xbf16>, vector<128x128xbf16>, vector<16x128xf32> -> vector<16x128xf32>
    %c0_16 = arith.constant 0 : index
    %c384 = arith.constant 384 : index
    %30 = vector.load %arg3[%c0_16, %c384] : memref<128x512xbf16, #tpu.memory_space<vmem>>, vector<1x128xbf16>
    %31 = arith.extf %30 : vector<1x128xbf16> to vector<1x128xf32>
    %32 = vector.broadcast %31 : vector<1x128xf32> to vector<16x128xf32>
    %33 = arith.addf %29, %32 : vector<16x128xf32>
    %c0_17 = arith.constant 0 : index
    %c0_18 = arith.constant 0 : index
    %34 = vector.load %arg6[%c0_17, %c0_18] : memref<16x512xf32, #tpu.memory_space<vmem>>, vector<16x128xf32>
    tpu.vector_store %arg6[%c0_17, %c0_18], %33 {strides = array<i32>} : memref<16x512xf32, #tpu.memory_space<vmem>>, vector<16x128xf32>,
    %c0_19 = arith.constant 0 : index
    %c128 = arith.constant 128 : index
    %35 = vector.load %arg6[%c0_19, %c128] : memref<16x512xf32, #tpu.memory_space<vmem>>, vector<16x128xf32>
    tpu.vector_store %arg6[%c0_19, %c128], %7 {strides = array<i32>} : memref<16x512xf32, #tpu.memory_space<vmem>>, vector<16x128xf32>,
    %c0_20 = arith.constant 0 : index
    %c256_21 = arith.constant 256 : index
    %36 = vector.load %arg6[%c0_20, %c256_21] : memref<16x512xf32, #tpu.memory_space<vmem>>, vector<16x128xf32>
    tpu.vector_store %arg6[%c0_20, %c256_21], %19 {strides = array<i32>} : memref<16x512xf32, #tpu.memory_space<vmem>>, vector<16x128xf32>,
    %c0_22 = arith.constant 0 : index
    %c384_23 = arith.constant 384 : index
    %37 = vector.load %arg6[%c0_22, %c384_23] : memref<16x512xf32, #tpu.memory_space<vmem>>, vector<16x128xf32>
    tpu.vector_store %arg6[%c0_22, %c384_23], %21 {strides = array<i32>} : memref<16x512xf32, #tpu.memory_space<vmem>>, vector<16x128xf32>,
    return
  }
  func.func @transform_0(%arg0: i32) -> (i32, i32) {
    %c0_i32 = arith.constant 0 : i32
    %c0_i32_0 = arith.constant 0 : i32
    return %arg0, %c0_i32 : i32, i32
  }
  func.func @transform_1(%arg0: i32) -> (i32, i32) {
    %c0_i32 = arith.constant 0 : i32
    %c0_i32_0 = arith.constant 0 : i32
    %c0_i32_1 = arith.constant 0 : i32
    return %c0_i32, %c0_i32_0 : i32, i32
  }
  func.func @transform_2(%arg0: i32) -> (i32, i32) {
    %c0_i32 = arith.constant 0 : i32
    %c0_i32_0 = arith.constant 0 : i32
    %c0_i32_1 = arith.constant 0 : i32
    return %c0_i32, %c0_i32_0 : i32, i32
  }
  func.func @transform_3(%arg0: i32) -> (i32, i32) {
    %c0_i32 = arith.constant 0 : i32
    %c0_i32_0 = arith.constant 0 : i32
    %c0_i32_1 = arith.constant 0 : i32
    return %c0_i32, %c0_i32_0 : i32, i32
  }
  func.func @transform_4(%arg0: i32) -> (i32, i32) {
    %c0_i32 = arith.constant 0 : i32
    %c0_i32_0 = arith.constant 0 : i32
    %c0_i32_1 = arith.constant 0 : i32
    return %c0_i32, %c0_i32_0 : i32, i32
  }
  func.func @transform_5(%arg0: i32) -> (i32, i32) {
    %c0_i32 = arith.constant 0 : i32
    %c0_i32_0 = arith.constant 0 : i32
    return %arg0, %c0_i32 : i32, i32
  }
}

</mosaic_0001>

<bundles_post_ra>
// kernel: tpu_custom_call.1
= control target key start
LH: loop header
LB: loop body
LE: loop exit
PB: predicated region body
PF: predicated region fallthrough
CT: control target
= control target key end

     0   :  { %10 = vsyncpa [#allocation3], 0  ;;  %s1125_s0 = inlined_call_operand.hbm [shape: bf16[16,128], index: 0, kind: input, shape index: {}]   ;;  %s1126_s1 = inlined_call_operand.hbm [shape: bf16[128,128], index: 1, kind: input, shape index: {}]   ;;  %s1127_s2 = inlined_call_operand.hbm [shape: bf16[128,512], index: 2, kind: input, shape index: {}]   ;;  %s1128_s3 = inlined_call_operand.hbm [shape: bf16[128,128], index: 3, kind: input, shape index: {}]   ;;  %s1129_s4 = inlined_call_operand.hbm [shape: f32[8,128], index: 4, kind: input, shape index: {}]   ;;  %s1130_s5 = inlined_call_operand.hbm [shape: f32[16,512], index: 5, kind: output, shape index: {}]  }
   0x1   :  { %11 = vsyncpa [#allocation6], 0 }
   0x2   :  { %12 = vsyncpa [#allocation9], 0 }
   0x3   :  { %13 = vsyncpa [#allocation4], 0  ;;  %s1019_s18 = smov [#allocation5]   ;;  %s1020_s20 = smov [#allocation8]  }
   0x4   :  { %s31_s19 = sshll.u32 %s1019_s18, 4  ;;  %s55_s21 = sshll.u32 %s1020_s20, 4  ;;  %s32_s19 = int_to_ptr.vmem [resolvable:$true] %s31_s19  ;;  %s56_s21 = int_to_ptr.vmem [resolvable:$true] %s55_s21 }
   0x5   :  { %s899_s22 = scalar_lea.vmem %s32_s19, 1024  ;;  %p904_p1 = scmp.lt.s32.totalorder %s32_s19, %s32_s19 }
   0x6   :  { %p900_p0 = scmp.ne.s32.totalorder %s32_s19, %s899_s22  ;;  %p905_p2 = scmp.lt.s32.totalorder %s899_s22, %s899_s22 }
   0x8   :  { %p906_p3 = por %p905_p2, %p904_p1 }
   0xa   :  { %p907_p4 = pnand %p906_p3, %p900_p0 }
   0xc   :  { %910 = shalt.err (!%p907_p4)
}
   0xd   :  { %s1021_s23 = smov 64   ;;  %s1022_s24 = smov 4  }
   0xe   :  { %37 = dma.hbm_to_vmem [thread:$0]  %s1126_s1, 1024, %s32_s19, [#allocation6], %s1021_s23, %s1021_s23, %s1022_s24  }
   0xf   :  { %s919_s27 = scalar_lea.vmem %s56_s21, 1024  ;;  %p924_p6 = scmp.lt.s32.totalorder %s56_s21, %s56_s21 }
  0x10   :  { %p920_p5 = scmp.ne.s32.totalorder %s56_s21, %s919_s27  ;;  %p925_p7 = scmp.lt.s32.totalorder %s919_s27, %s919_s27 }
  0x12   :  { %p926_p8 = por %p925_p7, %p924_p6 }
  0x14   :  { %p927_p9 = pnand %p926_p8, %p920_p5 }
  0x16   :  { %930 = shalt.err (!%p927_p9)
}
  0x17   :  { %61 = dma.hbm_to_vmem [thread:$0]  %s1128_s3, 1024, %s56_s21, [#allocation9], %s1021_s23, %s1021_s23, %s1022_s24  }
  0x18   :  { %s1023_s30 = smov [#allocation2]   ;;  %s1024_s7 = smov [#allocation7]  }
  0x19   :  { %s19_s6 = sshll.u32 %s1023_s30, 4  ;;  %s43_s8 = sshll.u32 %s1024_s7, 4  ;;  %s20_s6 = int_to_ptr.vmem [resolvable:$true] %s19_s6  ;;  %s44_s8 = int_to_ptr.vmem [resolvable:$true] %s43_s8 }
  0x1a   :  { %s939_s9 = scalar_lea.vmem %s20_s6, 128  ;;  %p944_p11 = scmp.lt.s32.totalorder %s20_s6, %s20_s6 }
  0x1b   :  { %p940_p10 = scmp.ne.s32.totalorder %s20_s6, %s939_s9  ;;  %p945_p12 = scmp.lt.s32.totalorder %s939_s9, %s939_s9 }
  0x1d   :  { %p946_p13 = por %p945_p12, %p944_p11 }
  0x1f   :  { %p947_p0 = pnand %p946_p13, %p940_p10 }
  0x21   :  { %950 = shalt.err (!%p947_p0)
}
  0x22   :  { %25 = dma.hbm_to_vmem [thread:$0]  %s1125_s0, 128, %s20_s6, [#allocation3], %s1021_s23, %s1021_s23, %s1022_s24  }
  0x23   :  { %s959_s11 = scalar_lea.vmem %s44_s8, 4096  ;;  %p964_p2 = scmp.lt.s32.totalorder %s44_s8, %s44_s8 }
  0x24   :  { %p960_p1 = scmp.ne.s32.totalorder %s44_s8, %s959_s11  ;;  %p965_p3 = scmp.lt.s32.totalorder %s959_s11, %s959_s11 }
  0x26   :  { %p966_p4 = por %p965_p3, %p964_p2 }
  0x28   :  { %p967_p5 = pnand %p966_p4, %p960_p1 }
  0x2a   :  { %970 = shalt.err (!%p967_p5)
}
  0x2b   :  { %s1025_s3 = smov 256   ;;  %s1026_s12 = smov 16  }
  0x2c   :  { %49 = dma.hbm_to_vmem [thread:$0]  %s1127_s2, 4096, %s44_s8, [#allocation6], %s1025_s3, %s1025_s3, %s1026_s12  }
  0x2d   :  { %s1027_s15 = smov [#allocation10]  }
  0x2e   :  { %s68_s16 = sshll.u32 %s1027_s15, 4  ;;  %s69_s16 = int_to_ptr.vmem [resolvable:$true] %s68_s16 }
  0x2f   :  { %s979_s17 = scalar_lea.vmem %s69_s16, 128  ;;  %p984_p7 = scmp.lt.s32.totalorder %s69_s16, %s69_s16 }
  0x30   :  { %p980_p6 = scmp.ne.s32.totalorder %s69_s16, %s979_s17  ;;  %p985_p8 = scmp.lt.s32.totalorder %s979_s17, %s979_s17 }
  0x32   :  { %p986_p9 = por %p985_p8, %p984_p7 }
  0x34   :  { %p987_p10 = pnand %p986_p9, %p980_p6 }
  0x36   :  { %990 = shalt.err (!%p987_p10)
}
  0x37   :  { %71 = dma.hbm_to_vmem [thread:$0]  %s1129_s4, 128, %s69_s16, [#allocation9]  }
  0x38   :  { %1011 = dma.done.wait [#allocation3], 128  }
  0x39   :  { %1012 = vsyncadd [#allocation3], 4294967168 }
  0x3a   :  { %1013 = dma.done.wait [#allocation6], 5120  }
  0x3b   :  { %1014 = vsyncadd [#allocation6], 4294962176 }
  0x3c   :  { %1015 = dma.done.wait [#allocation9], 1152  }
  0x3d   :  { %1016 = vsyncadd [#allocation9], 4294966144  ;;  %v1028_v0 = vmov 0   ;;  %v1029_v1 = vmov 0.0   ;;  %v830_v2 = vld [vmem:[#allocation7 + $0xe4] ss:$16 sps:$4 sm:$0xff]  }
  0x3e   :  { %240 = vmatprep.mubr.bf16.mxu0 %v1028_v0  ;;  %735 = vmatprep.subr.bf16.mxu1 %v1029_v1  ;;  %v832_v3 = vld [vmem:[#allocation7 + $0xe0] ss:$16 sps:$4 sm:$0xff]   ;;  %v833_v4 = vld [vmem:[#allocation7 + $0xc4] ss:$16 sps:$4 sm:$0xff]   ;;  %v855_v11 = vld [vmem:[#allocation5 + $0x38] sm:$0xff]   ;;  %vm1030_vm0 = vmmov 0  }
  0x3f   :  { %208 = vmatprep.subr.bf16.mxu0 %v830_v2  ;;  %v835_v5 = vld [vmem:[#allocation7 + $0xc0] ss:$16 sps:$4 sm:$0xff]   ;;  %v836_v6 = vld [vmem:[#allocation7 + $0xa4] ss:$16 sps:$4 sm:$0xff]   ;;  %736 = vmatpush3.bf16.xpose.msra.mxu1 %v855_v11  ;;  %v857_v19 = vld [vmem:[#allocation5 + $0x28] sm:$0xff]   ;;  %s1031_s2 = smov [#allocation11]  }
  0x40   :  { %209 = vmatpush1.bf16.msra.mxu0 %v832_v3  ;;  %v838_v7 = vld [vmem:[#allocation7 + $0xa0] ss:$16 sps:$4 sm:$0xff]   ;;  %v839_v8 = vld [vmem:[#allocation7 + $0x84] ss:$16 sps:$4 sm:$0xff]   ;;  %737 = vmatprep.subr.bf16.mxu1 %v1029_v1  ;;  %v854_v21 = vld [vmem:[#allocation2] sm:$0xff]   ;;  %s643_s4 = sshll.u32 %s1031_s2, 4  ;;  %s644_s4 = int_to_ptr.vmem [resolvable:$true] %s643_s4 }
  0x41   :  { %210 = vmatprep.subr.bf16.mxu0 %v833_v4  ;;  %v841_v9 = vld [vmem:[#allocation7 + $0x80] ss:$16 sps:$4 sm:$0xff]   ;;  %v842_v10 = vld [vmem:[#allocation7 + $0x64] ss:$16 sps:$4 sm:$0xff]   ;;  %v859_v23 = vld [vmem:[#allocation5 + $0x18] sm:$0xff]   ;;  %751 = vmatprep.mubr.msk.bf16.mxu1 %vm1030_vm0, %v1029_v1  ;;  %s991_s19 = scalar_lea.vmem %s644_s4, 1024  ;;  %p996_p12 = scmp.lt.s32.totalorder %s644_s4, %s644_s4 }
  0x42   :  { %v844_v12 = vld [vmem:[#allocation7 + $0x60] ss:$16 sps:$4 sm:$0xff]   ;;  %v845_v13 = vld [vmem:[#allocation7 + $0x44] ss:$16 sps:$4 sm:$0xff]   ;;  %v861_v25 = vld [vmem:[#allocation5 + $0x8] sm:$0xff]   ;;  %p992_p11 = scmp.ne.s32.totalorder %s644_s4, %s991_s19  ;;  %p997_p13 = scmp.lt.s32.totalorder %s991_s19, %s991_s19 }
  0x43   :  { %v847_v14 = vld [vmem:[#allocation7 + $0x40] ss:$16 sps:$4 sm:$0xff]   ;;  %v848_v15 = vld [vmem:[#allocation7 + $0x24] ss:$16 sps:$4 sm:$0xff]   ;;  %v863_v52 = vld [vmem:[#allocation8 + $0x38] sm:$0xff]  }
  0x44   :  { %211 = vmatpush1.bf16.msra.mxu0 %v835_v5  ;;  %v856_v16 = vld [vmem:[#allocation5 + $0x30] sm:$0xff]   ;;  %v858_v22 = vld [vmem:[#allocation5 + $0x20] sm:$0xff]   ;;  %v865_v55 = vld [vmem:[#allocation8 + $0x28] sm:$0xff]   ;;  %p998_p0 = por %p997_p13, %p996_p12 }
  0x45   :  { %212 = vmatprep.subr.bf16.mxu0 %v836_v6  ;;  %v850_v17 = vld [vmem:[#allocation7 + $0x20] ss:$16 sps:$4 sm:$0xff]   ;;  %v851_v18 = vld [vmem:[#allocation7 + $0x4] ss:$16 sps:$4 sm:$0xff]   ;;  %v867_v57 = vld [vmem:[#allocation8 + $0x18] sm:$0xff]  }
  0x46   :  { %v853_v20 = vld [vmem:[#allocation7] ss:$16 sps:$4 sm:$0xff]   ;;  %v869_v59 = vld [vmem:[#allocation8 + $0x8] sm:$0xff]   ;;  %p999_p1 = pnand %p998_p0, %p992_p11 }
  0x47   :  { %738 = vmatpush3.bf16.xpose.msra.mxu1 %v856_v16  ;;  %v860_v24 = vld [vmem:[#allocation5 + $0x10] sm:$0xff]   ;;  %v862_v26 = vld [vmem:[#allocation5] sm:$0xff]   ;;  %v871_v61 = vld [vmem:[#allocation7 + $0xe8] ss:$16 sps:$4 sm:$0xff]  }
  0x48   :  { %213 = vmatpush1.bf16.msra.mxu0 %v838_v7  ;;  %739 = vmatprep.subr.bf16.mxu1 %v1029_v1  ;;  %v682_v31 = vld [vmem:[#allocation10] ss:$0 sm:$0xff]  ;;  %v864_v54 = vld [vmem:[#allocation8 + $0x30] sm:$0xff]   ;;  %v872_v62 = vld [vmem:[#allocation7 + $0xc8] ss:$16 sps:$4 sm:$0xff]  }
  0x49   :  { %214 = vmatprep.subr.bf16.mxu0 %v839_v8  ;;  %v866_v56 = vld [vmem:[#allocation8 + $0x20] sm:$0xff]   ;;  %v868_v58 = vld [vmem:[#allocation8 + $0x10] sm:$0xff]   ;;  %v873_v6 = vld [vmem:[#allocation7 + $0xa8] ss:$16 sps:$4 sm:$0xff]  }
  0x4a   :  { %v870_v60 = vld [vmem:[#allocation8] sm:$0xff]   ;;  %v874_v7 = vld [vmem:[#allocation7 + $0x88] ss:$16 sps:$4 sm:$0xff]  }
  0x4b   :  { %v875_v8 = vld [vmem:[#allocation7 + $0x68] ss:$16 sps:$4 sm:$0xff]  }
  0x4c   :  { %215 = vmatpush1.bf16.msra.mxu0 %v841_v9  ;;  %v876_v9 = vld [vmem:[#allocation7 + $0x48] ss:$16 sps:$4 sm:$0xff]  }
  0x4d   :  { %216 = vmatprep.subr.bf16.mxu0 %v842_v10  ;;  %v877_v10 = vld [vmem:[#allocation7 + $0x28] ss:$16 sps:$4 sm:$0xff]  }
  0x4f   :  { %740 = vmatpush3.bf16.xpose.msra.mxu1 %v857_v19 }
  0x50   :  { %217 = vmatpush1.bf16.msra.mxu0 %v844_v12  ;;  %741 = vmatprep.subr.bf16.mxu1 %v1029_v1 }
  0x51   :  { %218 = vmatprep.subr.bf16.mxu0 %v845_v13 }
  0x54   :  { %219 = vmatpush1.bf16.msra.mxu0 %v847_v14 }
  0x55   :  { %220 = vmatprep.subr.bf16.mxu0 %v848_v15 }
  0x57   :  { %742 = vmatpush3.bf16.xpose.msra.mxu1 %v858_v22 }
  0x58   :  { %221 = vmatpush1.bf16.msra.mxu0 %v850_v17  ;;  %743 = vmatprep.subr.bf16.mxu1 %v1029_v1 }
  0x59   :  { %222 = vmatprep.subr.bf16.mxu0 %v851_v18 }
  0x5c   :  { %223 = vmatpush1.bf16.msra.mxu0 %v853_v20 }
  0x5d   :  { %755 = vmatprep.subr.bf16.mxu0 %v1029_v1 }
  0x5f   :  { %241 = vmatmul.mubr.bf16.vlgmr.msra.gmra.mxu0 %v854_v21  ;;  %744 = vmatpush3.bf16.xpose.msra.mxu1 %v859_v23  ;;  %v537_v21 = vlaneseq }
  0x60   :  { %756 = vmatpush3.bf16.msra.mxu0 %v855_v11  ;;  %745 = vmatprep.subr.bf16.mxu1 %v1029_v1  ;;  %v878_v11 = vld [vmem:[#allocation7 + $0x8] ss:$16 sps:$4 sm:$0xff]  }
  0x61   :  { %757 = vmatprep.subr.bf16.mxu0 %v1029_v1  ;;  %771 = vmatprep.mubr.msk.bf16.mxu0 %vm1030_vm0, %v1029_v1 }
  0x64   :  { %758 = vmatpush3.bf16.msra.mxu0 %v856_v16 }
  0x65   :  { %759 = vmatprep.subr.bf16.mxu0 %v1029_v1 }
  0x67   :  { %746 = vmatpush3.bf16.xpose.msra.mxu1 %v860_v24 }
  0x68   :  { %760 = vmatpush3.bf16.msra.mxu0 %v857_v19  ;;  %747 = vmatprep.subr.bf16.mxu1 %v1029_v1 }
  0x69   :  { %761 = vmatprep.subr.bf16.mxu0 %v1029_v1 }
  0x6c   :  { %762 = vmatpush3.bf16.msra.mxu0 %v858_v22  ;;  %v538_v22 = vshrl.u32 %v537_v21, 7 }
  0x6d   :  { %763 = vmatprep.subr.bf16.mxu0 %v1029_v1 }
  0x6f   :  { %748 = vmatpush3.bf16.xpose.msra.mxu1 %v861_v25 }
  0x70   :  { %764 = vmatpush3.bf16.msra.mxu0 %v859_v23  ;;  %749 = vmatprep.subr.bf16.mxu1 %v1029_v1  ;;  %v535_v23 = vld [vmem:[#allocation7 + $0xc] sm:$0x1] }
  0x71   :  { %765 = vmatprep.subr.bf16.mxu0 %v1029_v1 }
  0x74   :  { %766 = vmatpush3.bf16.msra.mxu0 %v860_v24  ;;  %v536_v24 = vunpack.c.l.bf16 %v535_v23 }
  0x75   :  { %767 = vmatprep.subr.bf16.mxu0 %v1029_v1 }
  0x77   :  { %750 = vmatpush3.bf16.xpose.msra.mxu1 %v862_v26 }
  0x78   :  { %768 = vmatpush3.bf16.msra.mxu0 %v861_v25  ;;  %795 = vmatprep.subr.bf16.mxu1 %v1029_v1  ;;  %v539_v25 = vsub.s32 0, %v538_v22 }
  0x79   :  { %769 = vmatprep.subr.bf16.mxu0 %v1029_v1 }
  0x7c   :  { %770 = vmatpush3.bf16.msra.mxu0 %v862_v26 }
  0x7d   :  { %775 = vmatprep.subr.bf16.mxu0 %v1029_v1 }
 0x11f   :  { %v242_v27 = vpop.f32.mrf.mxu0 }
 0x121   :  { %v1101_v28 = vpop.f32.mrf.mxu0 }
 0x123   :  { %v246_v29 = vpop.f32.mrf.mxu0 }
 0x124   :  { %v251_v30 = vpack.c.bf16 %v246_v29, %v242_v27 }
 0x125   :  { %v248_v63 = vpop.f32.mrf.mxu0 }
 0x126   :  { %752 = vmatmul.mubr.bf16.vlgmr.msra.gmra.mxu1 %v251_v30 }
 0x127   :  { %811 = vmatprep.mubr.msk.bf16.mxu1 %vm1030_vm0, %v1029_v1  ;;  %796 = vmatpush3.bf16.msra.mxu1 %v871_v61 }
 0x128   :  { %797 = vmatprep.subr.bf16.mxu1 %v1029_v1 }
 0x12b   :  { %798 = vmatpush3.bf16.msra.mxu1 %v872_v62 }
 0x12c   :  { %799 = vmatprep.subr.bf16.mxu1 %v1029_v1 }
 0x12f   :  { %800 = vmatpush3.bf16.msra.mxu1 %v873_v6 }
 0x130   :  { %801 = vmatprep.subr.bf16.mxu1 %v1029_v1 }
 0x133   :  { %802 = vmatpush3.bf16.msra.mxu1 %v874_v7 }
 0x134   :  { %803 = vmatprep.subr.bf16.mxu1 %v1029_v1 }
 0x137   :  { %804 = vmatpush3.bf16.msra.mxu1 %v875_v8 }
 0x138   :  { %805 = vmatprep.subr.bf16.mxu1 %v1029_v1 }
 0x13b   :  { %806 = vmatpush3.bf16.msra.mxu1 %v876_v9 }
 0x13c   :  { %807 = vmatprep.subr.bf16.mxu1 %v1029_v1 }
 0x13f   :  { %808 = vmatpush3.bf16.msra.mxu1 %v877_v10 }
 0x140   :  { %809 = vmatprep.subr.bf16.mxu1 %v1029_v1 }
 0x143   :  { %810 = vmatpush3.bf16.msra.mxu1 %v878_v11 }
 0x1e6   :  { %v334_v32 = vpop.f32.mrf.mxu1 }
 0x1e7   :  { %632 = vst [vmem:[#allocation11 + $0x8] sm:$0xff] %v334_v32  ;;  %v346_v33 = vadd.f32 %v682_v31, %v334_v32 }
 0x1e8   :  { %v753_v34 = vpop.f32.mrf.mxu1 }
 0x1e9   :  { %348 = vmax.xlane.f32.xlu0 %v346_v33 }
 0x1ea   :  { %v337_v35 = vpop.f32.mrf.mxu1 }
 0x1eb   :  { %633 = vst [vmem:[#allocation11 + $0x28] sm:$0xff] %v337_v35  ;;  %v347_v36 = vadd.f32 %v682_v31, %v337_v35 }
 0x1ec   :  { %v754_v37 = vpop.f32.mrf.mxu1 }
 0x1ed   :  { %350 = vmax.xlane.f32.xlu0 %v347_v36 }
 0x272   :  { %v349_v38 = vpop.xlane.xlu0 %348 }
 0x273   :  { %v352_v39 = vsub.f32 %v346_v33, %v349_v38 }
 0x275   :  { %v354_v40 = vmul.f32 1.442695, %v352_v39 }
 0x276   :  { %v351_v41 = vpop.xlane.xlu0 %350 }
 0x277   :  { %879 = vpow2.f32 %v354_v40  ;;  %v353_v42 = vsub.f32 %v347_v36, %v351_v41 }
 0x279   :  { %v356_v43 = vmul.f32 1.442695, %v353_v42 }
 0x27b   :  { %881 = vpow2.f32 %v356_v43 }
 0x284   :  { %v880_v44 = vpop.eup %879 }
 0x285   :  { %358 = vadd.xlane.f32.xlu1 %v880_v44 }
 0x288   :  { %v882_v45 = vpop.eup %881 }
 0x289   :  { %360 = vadd.xlane.f32.xlu1 %v882_v45 }
 0x30e   :  { %v359_v46 = vpop.xlane.xlu1 %358 }
 0x30f   :  { %883 = vrcp.f32 %v359_v46 }
 0x312   :  { %v361_v47 = vpop.xlane.xlu1 %360 }
 0x313   :  { %885 = vrcp.f32 %v361_v47 }
 0x31c   :  { %v884_v48 = vpop.eup %883 }
 0x31d   :  { %v363_v49 = vmul.f32 %v884_v48, %v880_v44 }
 0x31f   :  { %634 = vst [vmem:[#allocation11 + $0x10] sm:$0xff] %v363_v49 }
 0x320   :  { %v886_v50 = vpop.eup %885 }
 0x321   :  { %v365_v51 = vmul.f32 %v886_v50, %v882_v45 }
 0x323   :  { %v366_v53 = vpack.c.bf16 %v365_v51, %v363_v49  ;;  %635 = vst [vmem:[#allocation11 + $0x30] sm:$0xff] %v365_v51 }
 0x325   :  { %772 = vmatmul.mubr.bf16.vlgmr.msra.gmra.mxu0 %v366_v53 }
 0x326   :  { %776 = vmatpush3.bf16.msra.mxu0 %v863_v52  ;;  %791 = vmatprep.mubr.msk.bf16.mxu0 %vm1030_vm0, %v1029_v1 }
 0x327   :  { %777 = vmatprep.subr.bf16.mxu0 %v1029_v1 }
 0x32a   :  { %778 = vmatpush3.bf16.msra.mxu0 %v864_v54 }
 0x32b   :  { %779 = vmatprep.subr.bf16.mxu0 %v1029_v1 }
 0x32e   :  { %780 = vmatpush3.bf16.msra.mxu0 %v865_v55 }
 0x32f   :  { %781 = vmatprep.subr.bf16.mxu0 %v1029_v1 }
 0x332   :  { %782 = vmatpush3.bf16.msra.mxu0 %v866_v56 }
 0x333   :  { %783 = vmatprep.subr.bf16.mxu0 %v1029_v1 }
 0x336   :  { %784 = vmatpush3.bf16.msra.mxu0 %v867_v57 }
 0x337   :  { %785 = vmatprep.subr.bf16.mxu0 %v1029_v1 }
 0x33a   :  { %786 = vmatpush3.bf16.msra.mxu0 %v868_v58 }
 0x33b   :  { %787 = vmatprep.subr.bf16.mxu0 %v1029_v1 }
 0x33e   :  { %788 = vmatpush3.bf16.msra.mxu0 %v869_v59 }
 0x33f   :  { %789 = vmatprep.subr.bf16.mxu0 %v1029_v1  ;;  %v540_v1 = vrot.slane %v536_v24, %v539_v25 }
 0x342   :  { %790 = vmatpush3.bf16.msra.mxu0 %v870_v60 }
 0x3e5   :  { %v401_v0 = vpop.f32.mrf.mxu0 }
 0x3e6   :  { %636 = vst [vmem:[#allocation11 + $0x18] sm:$0xff] %v401_v0 }
 0x3e7   :  { %v773_v2 = vpop.f32.mrf.mxu0 }
 0x3e9   :  { %v404_v3 = vpop.f32.mrf.mxu0 }
 0x3ea   :  { %v408_v4 = vpack.c.bf16 %v404_v3, %v401_v0  ;;  %637 = vst [vmem:[#allocation11 + $0x38] sm:$0xff] %v404_v3 }
 0x3eb   :  { %v774_v5 = vpop.f32.mrf.mxu0 }
 0x3ec   :  { %792 = vmatmul.mubr.bf16.vlgmr.msra.gmra.mxu0 %v408_v4 }
 0x4ac   :  { %v507_v12 = vpop.f32.mrf.mxu0 }
 0x4ad   :  { %v514_v13 = vadd.f32 %v507_v12, %v1101_v28 }
 0x4ae   :  { %v793_v14 = vpop.f32.mrf.mxu0 }
 0x4af   :  { %887 = vtanh.f32 %v514_v13 }
 0x4b0   :  { %v510_v15 = vpop.f32.mrf.mxu0 }
 0x4b1   :  { %v515_v16 = vadd.f32 %v510_v15, %v248_v63 }
 0x4b2   :  { %v794_v17 = vpop.f32.mrf.mxu0 }
 0x4b3   :  { %889 = vtanh.f32 %v515_v16 }
 0x4bc   :  { %v888_v18 = vpop.eup %887 }
 0x4c0   :  { %v890_v19 = vpop.eup %889 }
 0x4c1   :  { %v518_v20 = vpack.c.bf16 %v890_v19, %v888_v18 }
 0x4c3   :  { %812 = vmatmul.mubr.bf16.vlgmr.msra.gmra.mxu1 %v518_v20 }
 0x583   :  { %v623_v26 = vpop.f32.mrf.mxu1 }
 0x584   :  { %v624_v27 = vadd.f32 %v623_v26, %v540_v1 }
 0x585   :  { %v813_v28 = vpop.f32.mrf.mxu1 }
 0x586   :  { %630 = vst [vmem:[#allocation11] sm:$0xff] %v624_v27 }
 0x587   :  { %v626_v29 = vpop.f32.mrf.mxu1 }
 0x588   :  { %v627_v30 = vadd.f32 %v626_v29, %v540_v1 }
 0x589   :  { %v814_v31 = vpop.f32.mrf.mxu1 }
 0x58a   :  { %631 = vst [vmem:[#allocation11 + $0x20] sm:$0xff] %v627_v30 }
 0x58b   :  { %1002 = shalt.err (!%p999_p1)
}
 0x58c   :  { %s1032_s20 = smov 512   ;;  %s1033_s21 = smov 32  }
 0x58d   :  { %649 = dma.vmem_to_hbm [thread:$0]  %s644_s4, 1024, %s1130_s5, [#allocation4], %s1032_s20, %s1032_s20, %s1033_s21  }
 0x58e   :  { %1017 = dma.done.wait [#allocation4], 1024  }
 0x58f   :  { %1018 = vsyncadd [#allocation4], 4294966272 }
 0x590   :  { %653 = vsyncpa [#allocation3], 1 }
 0x591   :  { %654 = vsyncpa [#allocation6], 1 }
 0x592   :  { %655 = vsyncpa [#allocation9], 1 }
 0x593   :  { %656 = vsyncpa [#allocation4], 1 }

</bundles_post_ra>
